<compile_context>
chip_gen: v6e
topology: v6e:2x2x1
jax: 0.10.0
libtpu: 0.0.40
codegen_flags: <defaults>
</compile_context>

<pallas_src>
import jax
import jax.numpy as jnp
from jax.experimental import pallas as pl
from jax.experimental.pallas import tpu as pltpu

LN_EPS = 1e-12  # nn.LayerNorm eps used by get_mlp_head


def _round_up(a, b):
    return ((a + b - 1) // b) * b


def box_head_kernel(x_ref, w1_ref, lnp_ref, w2_ref, b2_ref, o_ref):
    # x_ref: (tm, Din) f32 tile streamed directly from HBM. Round to bf16 in
    # VMEM/vregs so the first matmul is a single bf16 MXU pass (f32 accum).
    x = x_ref[...].astype(jnp.bfloat16)

    # Linear(input_size -> hidden_size): bf16 x bf16 -> f32 on the MXU.
    h = jnp.dot(x, w1_ref[...], preferred_element_type=jnp.float32)

    lnp = lnp_ref[...]                      # (3, H) f32: rows = [b1, gamma, beta]
    h = jnp.maximum(h + lnp[0:1, :], 0.0)   # + b1, ReLU

    # LayerNorm(hidden_size), two-pass variance (numerically safe for the
    # all-positive post-ReLU distribution; eps is tiny so don't rely on it).
    inv_h = 1.0 / h.shape[-1]
    mu = jnp.sum(h, axis=-1, keepdims=True) * inv_h
    d = h - mu
    var = jnp.sum(d * d, axis=-1, keepdims=True) * inv_h
    hn = d * jax.lax.rsqrt(var + LN_EPS)
    hn = hn * lnp[1:2, :] + lnp[2:3, :]     # * gamma + beta

    # Dropout(p=0.3): inference-mode identity.
    # TODO(synk): training-mode dropout (RNG mask) is not implemented.

    # Linear(hidden_size -> output_size=6): bf16 operands, f32 accumulation.
    y = jnp.dot(hn.astype(jnp.bfloat16), w2_ref[...],
                preferred_element_type=jnp.float32) + b2_ref[...]

    # box_prediction = cat([y[:, :3], exp(y[:, 3:])], dim=-1)
    col = jax.lax.broadcasted_iota(jnp.int32, y.shape, dimension=1)
    y = jnp.where(col >= 3, jnp.exp(y), y)

    o_ref[...] = y.astype(o_ref.dtype)


def box_head_forward(obj_embeds, params, *, tm=1024):
    """obj_embeds: (B, N, Din) float32 -> (B, N, Dout) float32."""
    w1, b1, gamma, beta, w2, b2 = params
    B, N, Din = obj_embeds.shape
    H = w1.shape[1]
    Dout = w2.shape[1]
    M = B * N

    # Row tile: large enough to amortize per-grid-step overhead and approach the
    # HBM roofline, capped so there are >= 4 grid steps (keeps per-core DMA
    # double-buffering even when the grid is split across v7x's two TCs) and
    # stays a multiple of 8 sublanes.
    tm = max(8, min(tm, _round_up(pl.cdiv(M, 4), 8)))
    grid_m = pl.cdiv(M, tm)

    # Stream f32 input directly (no separate cast pass, no pad pass in HBM).
    x2 = obj_embeds.reshape(M, Din)

    # Fold the three (1, H) LayerNorm/bias vectors into one (3, H) f32 constant.
    ln_params = jnp.concatenate(
        [b1.reshape(1, H), gamma.reshape(1, H), beta.reshape(1, H)], axis=0
    ).astype(jnp.float32)

    # Weights as bf16 constants: single-pass MXU path + half the VMEM footprint.
    w1_b = w1.astype(jnp.bfloat16)
    w2_b = w2.astype(jnp.bfloat16)
    b2_f = b2.reshape(1, Dout).astype(jnp.float32)

    out = pl.pallas_call(
        box_head_kernel,
        out_shape=jax.ShapeDtypeStruct((M, Dout), jnp.float32),
        grid_spec=pltpu.PrefetchScalarGridSpec(
            num_scalar_prefetch=0,
            grid=(grid_m,),
            in_specs=[
                pl.BlockSpec((tm, Din), lambda i: (i, 0)),    # x tile (f32)
                pl.BlockSpec((Din, H), lambda i: (0, 0)),     # W1 (bf16, constant)
                pl.BlockSpec((3, H), lambda i: (0, 0)),       # [b1; gamma; beta]
                pl.BlockSpec((H, Dout), lambda i: (0, 0)),    # W2 (bf16, constant)
                pl.BlockSpec((1, Dout), lambda i: (0, 0)),    # b2
            ],
            out_specs=pl.BlockSpec((tm, Dout), lambda i: (i, 0)),
        ),
        compiler_params=pltpu.CompilerParams(
            dimension_semantics=("parallel",),
            vmem_limit_bytes=32 * 1024 * 1024,
        ),
    )(x2, w1_b, ln_params, w2_b, b2_f)

    return out.reshape(B, N, Dout)


def init_params(key, input_size, hidden_size, output_size):
    k1, k2, k3, k4 = jax.random.split(key, 4)
    w1 = jax.random.normal(k1, (input_size, hidden_size), jnp.float32) * (1.0 / jnp.sqrt(input_size))
    b1 = jax.random.normal(k2, (1, hidden_size), jnp.float32) * 0.01
    gamma = jnp.ones((1, hidden_size), jnp.float32)
    beta = jnp.zeros((1, hidden_size), jnp.float32)
    w2 = jax.random.normal(k3, (hidden_size, output_size), jnp.float32) * (1.0 / jnp.sqrt(hidden_size))
    b2 = jax.random.normal(k4, (1, output_size), jnp.float32) * 0.01
    return (w1, b1, gamma, beta, w2, b2)


if __name__ == "__main__":
    # Small (batch, num_objects) with the module's real feature sizes. N=9 makes
    # M=18 non-divisible by tm=8 so the unpadded partial-tail path is exercised.
    B, N = 2, 9
    INPUT_SIZE, HIDDEN_SIZE, OUTPUT_SIZE = 768, 384, 6

    key = jax.random.PRNGKey(0)
    k_x, k_p = jax.random.split(key)
    obj_embeds = jax.random.normal(k_x, (B, N, INPUT_SIZE), jnp.float32)
    params = init_params(k_p, INPUT_SIZE, HIDDEN_SIZE, OUTPUT_SIZE)

    out = jax.block_until_ready(box_head_forward(obj_embeds, params))

    # Pure-JAX reference mirroring the kernel's numerics (bf16 operands with
    # f32 accumulation on both matmuls, f32 LayerNorm / elementwise math).
    w1, b1, gamma, beta, w2, b2 = params
    xb = obj_embeds.reshape(-1, INPUT_SIZE).astype(jnp.bfloat16)
    h = jnp.dot(xb, w1.astype(jnp.bfloat16), preferred_element_type=jnp.float32) + b1
    h = jnp.maximum(h, 0.0)
    mu = h.mean(-1, keepdims=True)
    var = ((h - mu) ** 2).mean(-1, keepdims=True)
    hn = (h - mu) * jax.lax.rsqrt(var + LN_EPS) * gamma + beta
    y = jnp.dot(hn.astype(jnp.bfloat16), w2.astype(jnp.bfloat16),
                preferred_element_type=jnp.float32) + b2
    ref = jnp.concatenate([y[:, :3], jnp.exp(y[:, 3:])], axis=-1).reshape(B, N, OUTPUT_SIZE)

    assert out.shape == (B, N, OUTPUT_SIZE)
    assert jnp.allclose(out, ref, atol=2e-2, rtol=2e-2), "mismatch vs reference"

    print("KERNEL_OK")
</pallas_src>

<mosaic_0001>
module attributes {stable_mosaic.version = 11 : i64} {
  func.func @box_head_kernel(%arg0: i32, %arg1: memref<8x768xf32, #tpu.memory_space<vmem>>, %arg2: memref<768x384xbf16, #tpu.memory_space<vmem>>, %arg3: memref<3x384xf32, #tpu.memory_space<vmem>>, %arg4: memref<384x6xbf16, #tpu.memory_space<vmem>>, %arg5: memref<1x6xf32, #tpu.memory_space<vmem>>, %arg6: memref<8x6xf32, #tpu.memory_space<vmem>>) attributes {dimension_semantics = [#tpu.dimension_semantics<parallel>], iteration_bounds = array<i64: 3>, scalar_prefetch = 0 : i64, scratch_operands = 0 : i64, tpu.core_type = #tpu.core_type<tc>, window_params = [{transform_indices = @transform_0, window_bounds = array<i64: 8, 768>}, {pipeline_mode = #tpu.pipeline_mode<synchronous>, transform_indices = @transform_1, window_bounds = array<i64: 768, 384>}, {pipeline_mode = #tpu.pipeline_mode<synchronous>, transform_indices = @transform_2, window_bounds = array<i64: 3, 384>}, {pipeline_mode = #tpu.pipeline_mode<synchronous>, transform_indices = @transform_3, window_bounds = array<i64: 384, 6>}, {pipeline_mode = #tpu.pipeline_mode<synchronous>, transform_indices = @transform_4, window_bounds = array<i64: 1, 6>}, {transform_indices = @transform_5, window_bounds = array<i64: 8, 6>}]} {
    %c0 = arith.constant 0 : index
    %c0_0 = arith.constant 0 : index
    %0 = vector.load %arg1[%c0, %c0_0] : memref<8x768xf32, #tpu.memory_space<vmem>>, vector<8x768xf32>
    %1 = arith.truncf %0 : vector<8x768xf32> to vector<8x768xbf16>
    %c0_1 = arith.constant 0 : index
    %c0_2 = arith.constant 0 : index
    %2 = vector.load %arg2[%c0_1, %c0_2] : memref<768x384xbf16, #tpu.memory_space<vmem>>, vector<768x384xbf16>
    %cst = arith.constant dense<0.000000e+00> : vector<8x384xf32>
    %3 = tpu.matmul %1, %2, %cst {dimension_numbers = #tpu.dot_dimension_numbers<[1], [0], [0], [1], [0, 0, 1, 1], [], []>} : vector<8x768xbf16>, vector<768x384xbf16>, vector<8x384xf32> -> vector<8x384xf32>
    %c0_3 = arith.constant 0 : index
    %c0_4 = arith.constant 0 : index
    %4 = vector.load %arg3[%c0_3, %c0_4] : memref<3x384xf32, #tpu.memory_space<vmem>>, vector<3x384xf32>
    %5 = vector.extract_strided_slice %4 {offsets = [0, 0], sizes = [1, 384], strides = [1, 1]} : vector<3x384xf32> to vector<1x384xf32>
    %6 = vector.broadcast %5 : vector<1x384xf32> to vector<8x384xf32>
    %7 = arith.addf %3, %6 : vector<8x384xf32>
    %cst_5 = arith.constant 0.000000e+00 : f32
    %8 = vector.broadcast %cst_5 : f32 to vector<8x384xf32>
    %9 = arith.maximumf %7, %8 : vector<8x384xf32>
    %cst_6 = arith.constant dense<0.000000e+00> : vector<8xf32>
    %10 = vector.multi_reduction <add>, %9, %cst_6 [1] : vector<8x384xf32> to vector<8xf32>
    %11 = vector.shape_cast %10 : vector<8xf32> to vector<8x1xf32>
    %cst_7 = arith.constant 0.00260416674 : f32
    %12 = vector.broadcast %cst_7 : f32 to vector<8x1xf32>
    %13 = arith.mulf %11, %12 : vector<8x1xf32>
    %14 = vector.broadcast %13 : vector<8x1xf32> to vector<8x384xf32>
    %15 = arith.subf %9, %14 : vector<8x384xf32>
    %16 = arith.mulf %15, %15 : vector<8x384xf32>
    %cst_8 = arith.constant dense<0.000000e+00> : vector<8xf32>
    %17 = vector.multi_reduction <add>, %16, %cst_8 [1] : vector<8x384xf32> to vector<8xf32>
    %18 = vector.shape_cast %17 : vector<8xf32> to vector<8x1xf32>
    %cst_9 = arith.constant 0.00260416674 : f32
    %19 = vector.broadcast %cst_9 : f32 to vector<8x1xf32>
    %20 = arith.mulf %18, %19 : vector<8x1xf32>
    %cst_10 = arith.constant 9.99999996E-13 : f32
    %21 = vector.broadcast %cst_10 : f32 to vector<8x1xf32>
    %22 = arith.addf %20, %21 : vector<8x1xf32>
    %23 = math.rsqrt %22 : vector<8x1xf32>
    %24 = vector.broadcast %23 : vector<8x1xf32> to vector<8x384xf32>
    %25 = arith.mulf %15, %24 : vector<8x384xf32>
    %26 = vector.extract_strided_slice %4 {offsets = [1, 0], sizes = [1, 384], strides = [1, 1]} : vector<3x384xf32> to vector<1x384xf32>
    %27 = vector.broadcast %26 : vector<1x384xf32> to vector<8x384xf32>
    %28 = arith.mulf %25, %27 : vector<8x384xf32>
    %29 = vector.extract_strided_slice %4 {offsets = [2, 0], sizes = [1, 384], strides = [1, 1]} : vector<3x384xf32> to vector<1x384xf32>
    %30 = vector.broadcast %29 : vector<1x384xf32> to vector<8x384xf32>
    %31 = arith.addf %28, %30 : vector<8x384xf32>
    %32 = arith.truncf %31 : vector<8x384xf32> to vector<8x384xbf16>
    %c0_11 = arith.constant 0 : index
    %c0_12 = arith.constant 0 : index
    %33 = vector.load %arg4[%c0_11, %c0_12] : memref<384x6xbf16, #tpu.memory_space<vmem>>, vector<384x6xbf16>
    %cst_13 = arith.constant dense<0.000000e+00> : vector<8x6xf32>
    %34 = tpu.matmul %32, %33, %cst_13 {dimension_numbers = #tpu.dot_dimension_numbers<[1], [0], [0], [1], [0, 0, 1, 1], [], []>} : vector<8x384xbf16>, vector<384x6xbf16>, vector<8x6xf32> -> vector<8x6xf32>
    %c0_14 = arith.constant 0 : index
    %c0_15 = arith.constant 0 : index
    %35 = vector.load %arg5[%c0_14, %c0_15] : memref<1x6xf32, #tpu.memory_space<vmem>>, vector<1x6xf32>
    %36 = vector.broadcast %35 : vector<1x6xf32> to vector<8x6xf32>
    %37 = arith.addf %34, %36 : vector<8x6xf32>
    %38 = tpu.iota {dimensions = array<i32: 1>} : vector<8x6xi32>
    %c3_i32 = arith.constant 3 : i32
    %39 = vector.broadcast %c3_i32 : i32 to vector<8x6xi32>
    %40 = arith.cmpi sge, %38, %39 : vector<8x6xi32>
    %41 = math.exp %37 : vector<8x6xf32>
    %42 = arith.select %40, %41, %37 : vector<8x6xi1>, vector<8x6xf32>
    %c0_16 = arith.constant 0 : index
    %c0_17 = arith.constant 0 : index
    %43 = vector.load %arg6[%c0_16, %c0_17] : memref<8x6xf32, #tpu.memory_space<vmem>>, vector<8x6xf32>
    tpu.vector_store %arg6[%c0_16, %c0_17], %42 {strides = array<i32>} : memref<8x6xf32, #tpu.memory_space<vmem>>, vector<8x6xf32>,
    return
  }
  func.func @transform_0(%arg0: i32) -> (i32, i32) {
    %c0_i32 = arith.constant 0 : i32
    %c0_i32_0 = arith.constant 0 : i32
    return %arg0, %c0_i32 : i32, i32
  }
  func.func @transform_1(%arg0: i32) -> (i32, i32) {
    %c0_i32 = arith.constant 0 : i32
    %c0_i32_0 = arith.constant 0 : i32
    %c0_i32_1 = arith.constant 0 : i32
    return %c0_i32, %c0_i32_0 : i32, i32
  }
  func.func @transform_2(%arg0: i32) -> (i32, i32) {
    %c0_i32 = arith.constant 0 : i32
    %c0_i32_0 = arith.constant 0 : i32
    %c0_i32_1 = arith.constant 0 : i32
    return %c0_i32, %c0_i32_0 : i32, i32
  }
  func.func @transform_3(%arg0: i32) -> (i32, i32) {
    %c0_i32 = arith.constant 0 : i32
    %c0_i32_0 = arith.constant 0 : i32
    %c0_i32_1 = arith.constant 0 : i32
    return %c0_i32, %c0_i32_0 : i32, i32
  }
  func.func @transform_4(%arg0: i32) -> (i32, i32) {
    %c0_i32 = arith.constant 0 : i32
    %c0_i32_0 = arith.constant 0 : i32
    %c0_i32_1 = arith.constant 0 : i32
    return %c0_i32, %c0_i32_0 : i32, i32
  }
  func.func @transform_5(%arg0: i32) -> (i32, i32) {
    %c0_i32 = arith.constant 0 : i32
    %c0_i32_0 = arith.constant 0 : i32
    return %arg0, %c0_i32 : i32, i32
  }
}

</mosaic_0001>

<bundles_post_ra>
// kernel: tpu_custom_call.1
= control target key start
LH: loop header
LB: loop body
LE: loop exit
PB: predicated region body
PF: predicated region fallthrough
CT: control target
= control target key end

     0   :  { %10 = vsyncpa [#allocation3], 0  ;;  %s2538_s18 = smov 0   ;;  %s2728_s0 = inlined_call_operand.vmem [shape: f32[18,768], index: 0, kind: input, shape index: {}]   ;;  %s2729_s1 = inlined_call_operand.hbm [shape: bf16[768,384], index: 1, kind: input, shape index: {}]   ;;  %s2730_s2 = inlined_call_operand.vmem [shape: f32[3,384], index: 2, kind: input, shape index: {}]   ;;  %s2731_s3 = inlined_call_operand.vmem [shape: bf16[384,6], index: 3, kind: input, shape index: {}]   ;;  %s2732_s4 = inlined_call_operand.vmem [shape: f32[1,6], index: 4, kind: input, shape index: {}]   ;;  %s2733_s5 = inlined_call_operand.vmem [shape: f32[18,6], index: 5, kind: output, shape index: {}]  }
   0x1 LB: > { %s2544_s19 = sadd.s32 4294967295, %s2501_s18   ;;  %p1926_p0 = scmp.ge.s32.totalorder %s2501_s18, 1  ;;  %s2501_s18 = sphi %s2538_s18, %s16_s18  }
   0x2   : > { %p157_p1 = scmp.lt.s32.totalorder %s2501_s18, 4  ;;  %s2503_s20 = smov [#allocation2]  }
   0x3   : > { %s169_s21 = sshll.u32 %s2503_s20, 4  ;;  %p2230_p3 = scmp.eq.s32.totalorder %s2544_s19, 0  ;;  %s170_s21 = int_to_ptr.vmem [resolvable:$true] %s169_s21 }
   0x4   : > { %p2548_p2 = pnand %p1926_p0, %p157_p1  ;;  %s2476_s23 = scalar_lea.vmem %s170_s21, 18432 }
   0x5   : > { %p2477_p7 = scmp.ne.s32.totalorder %s170_s21, %s2476_s23  ;;  %p2484_p10 = scmp.lt.s32.totalorder %s170_s21, %s170_s21 }
   0x6   : > { %p2226_p4 = pneg %p2548_p2  ;;  %p2485_p11 = scmp.lt.s32.totalorder %s2476_s23, %s2476_s23 }
   0x8   : > { %p2227_p5 = pnand %p2230_p3, %p2226_p4  ;;  %p2486_p12 = por %p2485_p11, %p2484_p10 }
   0xa   : > { %p2467_p6 = pneg %p2227_p5 }
   0xc   : > { %p2479_p8 = pnand %p2477_p7, %p2467_p6 }
   0xe   : > { %p2480_p9 = pneg %p2479_p8 }
  0x10   : > { %p2487_p13 = pnand %p2486_p12, %p2480_p9 }
  0x12   : > { %2490 = shalt.err (!%p2487_p13)
}
  0x13   : > { %s2504_s24 = smov 192   ;;  %s2505_s25 = smov 12  }
  0x14   : > { %2229 = dma.hbm_to_vmem [thread:$0]  (!%p2227_p5), %s2729_s1, 18432, %s170_s21, [#allocation3], %s2504_s24, %s2504_s24, %s2505_s25  }
  0x15   : > { %202 = sbr.rel (%p2548_p2) target bundleno = 923 (0x39b), region = 40 }
  0x1a   : > { %2496 = dma.done.wait (%p2230_p3), [#allocation3], 18432  }
  0x1b   : > { %2498 = vsyncadd (%p2230_p3), [#allocation3], 4294948864  ;;  %v2245_v0 = vld [vmem:[#allocation2 + $0xac] ss:$12 sps:$4 sm:$0xff]   ;;  %v2249_v2 = vld [vmem:[#allocation2 + $0xa8] ss:$12 sps:$4 sm:$0xff]  }
  0x1c   : > { %v2247_v1 = vld [vmem:[#allocation2 + $0x22c] ss:$12 sps:$4 sm:$0xff]   ;;  %1242 = vmatprep.subr.bf16.mxu0 %v2245_v0  ;;  %v2250_v3 = vld [vmem:[#allocation2 + $0x228] ss:$12 sps:$4 sm:$0xff]   ;;  %v2255_v6 = vld [vmem:[#allocation2 + $0x90] ss:$12 sps:$4 sm:$0xff]  }
  0x1d   : > { %1283 = vmatprep.subr.bf16.mxu1 %v2247_v1  ;;  %v2251_v4 = vld [vmem:[#allocation2 + $0x94] ss:$12 sps:$4 sm:$0xff]   ;;  %1243 = vmatpush1.bf16.msra.mxu0 %v2249_v2  ;;  %v2256_v7 = vld [vmem:[#allocation2 + $0x210] ss:$12 sps:$4 sm:$0xff]   ;;  %v2261_v10 = vld [vmem:[#allocation2 + $0x78] ss:$12 sps:$4 sm:$0xff]  }
  0x1e   : > { %1284 = vmatpush1.bf16.msra.mxu1 %v2250_v3  ;;  %v2253_v5 = vld [vmem:[#allocation2 + $0x214] ss:$12 sps:$4 sm:$0xff]   ;;  %1244 = vmatprep.subr.bf16.mxu0 %v2251_v4  ;;  %v2257_v8 = vld [vmem:[#allocation2 + $0x7c] ss:$12 sps:$4 sm:$0xff]   ;;  %v2262_v11 = vld [vmem:[#allocation2 + $0x1f8] ss:$12 sps:$4 sm:$0xff]  }
  0x1f   : > { %1285 = vmatprep.subr.bf16.mxu1 %v2253_v5  ;;  %v2259_v9 = vld [vmem:[#allocation2 + $0x1fc] ss:$12 sps:$4 sm:$0xff]   ;;  %v2263_v12 = vld [vmem:[#allocation2 + $0x64] ss:$12 sps:$4 sm:$0xff]   ;;  %v2267_v14 = vld [vmem:[#allocation2 + $0x60] ss:$12 sps:$4 sm:$0xff]  }
  0x20   : > { %v2265_v13 = vld [vmem:[#allocation2 + $0x1e4] ss:$12 sps:$4 sm:$0xff]   ;;  %v2268_v15 = vld [vmem:[#allocation2 + $0x1e0] ss:$12 sps:$4 sm:$0xff]   ;;  %v2273_v18 = vld [vmem:[#allocation2 + $0x48] ss:$12 sps:$4 sm:$0xff]  }
  0x21   : > { %1245 = vmatpush1.bf16.msra.mxu0 %v2255_v6  ;;  %v2269_v16 = vld [vmem:[#allocation2 + $0x4c] ss:$12 sps:$4 sm:$0xff]   ;;  %v2274_v19 = vld [vmem:[#allocation2 + $0x1c8] ss:$12 sps:$4 sm:$0xff]   ;;  %v2279_v22 = vld [vmem:[#allocation2 + $0x30] ss:$12 sps:$4 sm:$0xff]  }
  0x22   : > { %1286 = vmatpush1.bf16.msra.mxu1 %v2256_v7  ;;  %1246 = vmatprep.subr.bf16.mxu0 %v2257_v8  ;;  %v2271_v17 = vld [vmem:[#allocation2 + $0x1cc] ss:$12 sps:$4 sm:$0xff]   ;;  %v2275_v20 = vld [vmem:[#allocation2 + $0x34] ss:$12 sps:$4 sm:$0xff]   ;;  %v2280_v23 = vld [vmem:[#allocation2 + $0x1b0] ss:$12 sps:$4 sm:$0xff]  }
  0x23   : > { %1287 = vmatprep.subr.bf16.mxu1 %v2259_v9  ;;  %v2277_v21 = vld [vmem:[#allocation2 + $0x1b4] ss:$12 sps:$4 sm:$0xff]   ;;  %v2281_v24 = vld [vmem:[#allocation2 + $0x1c] ss:$12 sps:$4 sm:$0xff]   ;;  %v2285_v26 = vld [vmem:[#allocation2 + $0x18] ss:$12 sps:$4 sm:$0xff]  }
  0x24   : > { %v2283_v25 = vld [vmem:[#allocation2 + $0x19c] ss:$12 sps:$4 sm:$0xff]   ;;  %v2286_v27 = vld [vmem:[#allocation2 + $0x198] ss:$12 sps:$4 sm:$0xff]   ;;  %v2291_v30 = vld [vmem:[#allocation2] ss:$12 sps:$4 sm:$0xff]  }
  0x25   : > { %1247 = vmatpush1.bf16.msra.mxu0 %v2261_v10  ;;  %v2287_v28 = vld [vmem:[#allocation2 + $0x4] ss:$12 sps:$4 sm:$0xff]   ;;  %p229_p0 = scmp.lt.s32.totalorder %s2544_s19, 2  ;;  %v2292_v31 = vld [vmem:[#allocation2 + $0x180] ss:$12 sps:$4 sm:$0xff]   ;;  %vm2507_vm0 = vmmov 0  }
  0x26   : > { %1288 = vmatpush1.bf16.msra.mxu1 %v2262_v11  ;;  %1248 = vmatprep.subr.bf16.mxu0 %v2263_v12  ;;  %v2289_v29 = vld [vmem:[#allocation2 + $0x184] ss:$12 sps:$4 sm:$0xff]   ;;  %v2293_v32 = vld [vmem:[#allocation2 + $0x16c] ss:$12 sps:$4 sm:$0xff]   ;;  %v2297_v34 = vld [vmem:[#allocation2 + $0x168] ss:$12 sps:$4 sm:$0xff]  }
  0x27   : > { %1289 = vmatprep.subr.bf16.mxu1 %v2265_v13  ;;  %v2295_v33 = vld [vmem:[#allocation2 + $0x2ec] ss:$12 sps:$4 sm:$0xff]   ;;  %v2298_v35 = vld [vmem:[#allocation2 + $0x2e8] ss:$12 sps:$4 sm:$0xff]   ;;  %s2736_s19 = smov (!%p229_p0, %s2544_s19), 2  ;;  %vm1857_vm2 = vcmask 48128  }
  0x28   : > { %v2299_v36 = vld [vmem:[#allocation2 + $0x154] ss:$12 sps:$4 sm:$0xff]   ;;  %v2303_v38 = vld [vmem:[#allocation2 + $0x150] ss:$12 sps:$4 sm:$0xff]   ;;  %s2221_s28 = smul.u32 48, %s2736_s19  ;;  %s1932_s15 = sshll.u32 %s2736_s19, 3 }
  0x29   : > { %1249 = vmatpush1.bf16.msra.mxu0 %v2267_v14  ;;  %v2301_v37 = vld [vmem:[#allocation2 + $0x2d4] ss:$12 sps:$4 sm:$0xff]   ;;  %v2304_v39 = vld [vmem:[#allocation2 + $0x2d0] ss:$12 sps:$4 sm:$0xff]   ;;  %v2309_v42 = vld [vmem:[#allocation2 + $0x138] ss:$12 sps:$4 sm:$0xff]   ;;  %s237_s20 = scalar_lea.vmem %s2733_s5, %s1932_s15 }
  0x2a   : > { %1290 = vmatpush1.bf16.msra.mxu1 %v2268_v15  ;;  %1250 = vmatprep.subr.bf16.mxu0 %v2269_v16  ;;  %v2305_v40 = vld [vmem:[#allocation2 + $0x13c] ss:$12 sps:$4 sm:$0xff]   ;;  %v2310_v43 = vld [vmem:[#allocation2 + $0x2b8] ss:$12 sps:$4 sm:$0xff]   ;;  %s2574_s6 = scalar_lea.vmem %s2728_s0, %s2221_s28  ;;  %v2315_v47 = vld [vmem:[#allocation2 + $0x120] ss:$12 sps:$4 sm:$0xff]  }
  0x2b   : > { %1291 = vmatprep.subr.bf16.mxu1 %v2271_v17  ;;  %v2307_v41 = vld [vmem:[#allocation2 + $0x2bc] ss:$12 sps:$4 sm:$0xff]   ;;  %v2311_v44 = vld [vmem:[#allocation2 + $0x124] ss:$12 sps:$4 sm:$0xff]   ;;  %v2316_v50 = vld [vmem:[#allocation2 + $0x2a0] ss:$12 sps:$4 sm:$0xff]  }
  0x2c   : > { %v2313_v45 = vld [vmem:[#allocation2 + $0x2a4] ss:$12 sps:$4 sm:$0xff]   ;;  %v240_v46 = vld [vmem:[%s2574_s6 + $0x8] sm:$0xff]  ;;  %v242_v49 = vld [vmem:[%s2574_s6 + $0x18] sm:$0xff] }
  0x2d   : > { %1251 = vmatpush1.bf16.msra.mxu0 %v2273_v18  ;;  %v2577_v48 = vpack.c.bf16 %v240_v46, %v240_v46  ;;  %v2317_v51 = vld [vmem:[#allocation2 + $0x10c] ss:$12 sps:$4 sm:$0xff]   ;;  %v2580_v52 = vpack.c.bf16 %v242_v49, %v242_v49  ;;  %v2321_v54 = vld [vmem:[#allocation2 + $0x108] ss:$12 sps:$4 sm:$0xff]   ;;  %v2327_v58 = vld [vmem:[#allocation2 + $0xf0] ss:$12 sps:$4 sm:$0xff]  }
  0x2e   : > { %1292 = vmatpush1.bf16.msra.mxu1 %v2274_v19  ;;  %1252 = vmatprep.subr.bf16.mxu0 %v2275_v20  ;;  %v2319_v53 = vld [vmem:[#allocation2 + $0x28c] ss:$12 sps:$4 sm:$0xff]   ;;  %v2322_v55 = vld [vmem:[#allocation2 + $0x288] ss:$12 sps:$4 sm:$0xff]   ;;  %v2328_v59 = vld [vmem:[#allocation2 + $0x270] ss:$12 sps:$4 sm:$0xff]  }
  0x2f   : > { %1293 = vmatprep.subr.bf16.mxu1 %v2277_v21  ;;  %1274 = vmatprep.mubr.bf16.mxu0 %v2577_v48  ;;  %v2323_v56 = vld [vmem:[#allocation2 + $0xf4] ss:$12 sps:$4 sm:$0xff]   ;;  %v2329_v60 = vld [vmem:[#allocation2 + $0xdc] ss:$12 sps:$4 sm:$0xff]   ;;  %v2333_v62 = vld [vmem:[#allocation2 + $0xd8] ss:$12 sps:$4 sm:$0xff]  }
  0x30   : > { %1315 = vmatprep.mubr.bf16.mxu1 %v2580_v52  ;;  %v2325_v57 = vld [vmem:[#allocation2 + $0x274] ss:$12 sps:$4 sm:$0xff]   ;;  %v2331_v61 = vld [vmem:[#allocation2 + $0x25c] ss:$12 sps:$4 sm:$0xff]   ;;  %v2334_v63 = vld [vmem:[#allocation2 + $0x258] ss:$12 sps:$4 sm:$0xff]  }
  0x31   : > { %1253 = vmatpush1.bf16.msra.mxu0 %v2279_v22  ;;  %v2335_v0 = vld [vmem:[#allocation2 + $0xc4] ss:$12 sps:$4 sm:$0xff]   ;;  %v2339_v2 = vld [vmem:[#allocation2 + $0xc0] ss:$12 sps:$4 sm:$0xff]   ;;  %v2341_v8 = vld [vmem:[#allocation2 + $0x3a8] ss:$12 sps:$4 sm:$0xff]  }
  0x32   : > { %1294 = vmatpush1.bf16.msra.mxu1 %v2280_v23  ;;  %1254 = vmatprep.subr.bf16.mxu0 %v2281_v24  ;;  %v2337_v1 = vld [vmem:[#allocation2 + $0x244] ss:$12 sps:$4 sm:$0xff]   ;;  %v2340_v3 = vld [vmem:[#allocation2 + $0x240] ss:$12 sps:$4 sm:$0xff]   ;;  %v2353_v16 = vld [vmem:[#allocation2 + $0x37c] ss:$12 sps:$4 sm:$0xff]  }
  0x33   : > { %1295 = vmatprep.subr.bf16.mxu1 %v2283_v25  ;;  %v239_v4 = vld [vmem:[%s2574_s6] sm:$0xff]  ;;  %v241_v5 = vld [vmem:[%s2574_s6 + $0x10] sm:$0xff]  ;;  %v2343_v6 = vld [vmem:[#allocation2 + $0x3ac] ss:$12 sps:$4 sm:$0xff]  }
  0x34   : > { %v2344_v7 = vld [vmem:[#allocation2 + $0x170] ss:$12 sps:$4 sm:$0xff]   ;;  %v2586_v9 = vpack.c.bf16 %v239_v4, %v239_v4  ;;  %v2588_v10 = vpack.c.bf16 %v241_v5, %v241_v5  ;;  %v2348_v12 = vld [vmem:[#allocation2 + $0x394] ss:$12 sps:$4 sm:$0xff]   ;;  %v2349_v13 = vld [vmem:[#allocation2 + $0x158] ss:$12 sps:$4 sm:$0xff]  }
  0x35   : > { %1255 = vmatpush1.bf16.msra.mxu0 %v2285_v26  ;;  %v2345_v11 = vld [vmem:[#allocation2 + $0xb0] ss:$12 sps:$4 sm:$0xff]   ;;  %v2350_v15 = vld [vmem:[#allocation2 + $0x98] ss:$12 sps:$4 sm:$0xff]   ;;  %v2354_v17 = vld [vmem:[#allocation2 + $0x140] ss:$12 sps:$4 sm:$0xff]  }
  0x36   : > { %1296 = vmatpush1.bf16.msra.mxu1 %v2286_v27  ;;  %1256 = vmatprep.subr.bf16.mxu0 %v2287_v28  ;;  %v2346_v14 = vld [vmem:[#allocation2 + $0x390] ss:$12 sps:$4 sm:$0xff]   ;;  %v2351_v18 = vld [vmem:[#allocation2 + $0x378] ss:$12 sps:$4 sm:$0xff]   ;;  %v2355_v19 = vld [vmem:[#allocation2 + $0x80] ss:$12 sps:$4 sm:$0xff]  }
  0x37   : > { %1297 = vmatprep.subr.bf16.mxu1 %v2289_v29  ;;  %v2358_v20 = vld [vmem:[#allocation2 + $0x364] ss:$12 sps:$4 sm:$0xff]   ;;  %v2359_v21 = vld [vmem:[#allocation2 + $0x128] ss:$12 sps:$4 sm:$0xff]   ;;  %v2356_v22 = vld [vmem:[#allocation2 + $0x360] ss:$12 sps:$4 sm:$0xff]  }
  0x38   : > { %v2360_v23 = vld [vmem:[#allocation2 + $0x68] ss:$12 sps:$4 sm:$0xff]   ;;  %v2363_v24 = vld [vmem:[#allocation2 + $0x34c] ss:$12 sps:$4 sm:$0xff]   ;;  %v2364_v25 = vld [vmem:[#allocation2 + $0x110] ss:$12 sps:$4 sm:$0xff]  }
  0x39   : > { %1257 = vmatpush1.bf16.msra.mxu0 %v2291_v30  ;;  %v2361_v26 = vld [vmem:[#allocation2 + $0x348] ss:$12 sps:$4 sm:$0xff]   ;;  %v2365_v27 = vld [vmem:[#allocation2 + $0x50] ss:$12 sps:$4 sm:$0xff]   ;;  %v2369_v29 = vld [vmem:[#allocation2 + $0xf8] ss:$12 sps:$4 sm:$0xff]  }
  0x3a   : > { %1298 = vmatpush1.bf16.msra.mxu1 %v2292_v31  ;;  %1258 = vmatprep.subr.bf16.mxu0 %v2293_v32  ;;  %v2368_v28 = vld [vmem:[#allocation2 + $0x334] ss:$12 sps:$4 sm:$0xff]   ;;  %v2366_v30 = vld [vmem:[#allocation2 + $0x330] ss:$12 sps:$4 sm:$0xff]   ;;  %v2370_v31 = vld [vmem:[#allocation2 + $0x38] ss:$12 sps:$4 sm:$0xff]  }
  0x3b   : > { %1299 = vmatprep.subr.bf16.mxu1 %v2295_v33  ;;  %v2373_v32 = vld [vmem:[#allocation2 + $0x31c] ss:$12 sps:$4 sm:$0xff]   ;;  %v2374_v33 = vld [vmem:[#allocation2 + $0xe0] ss:$12 sps:$4 sm:$0xff]   ;;  %v2390_v49 = vld [vmem:[#allocation2 + $0x218] ss:$12 sps:$4 sm:$0xff]  }
  0x3c   : > { %v244_v46 = vld [vmem:[%s2574_s6 + $0x28] sm:$0xff]  ;;  %v2411_v4 = vld [vmem:[#allocation2 + $0x3d8] ss:$12 sps:$4 sm:$0xff]  }
  0x3d   : > { %1259 = vmatpush2.bf16.msra.mxu0 %v2297_v34  ;;  %v2371_v34 = vld [vmem:[#allocation2 + $0x318] ss:$12 sps:$4 sm:$0xff]   ;;  %v2415_v5 = vld [vmem:[#allocation2 + $0x1a0] ss:$12 sps:$4 sm:$0xff]  }
  0x3e   : > { %1300 = vmatpush2.bf16.msra.mxu1 %v2298_v35  ;;  %1260 = vmatprep.subr.bf16.mxu0 %v2299_v36  ;;  %v2375_v35 = vld [vmem:[#allocation2 + $0x20] ss:$12 sps:$4 sm:$0xff]   ;;  %v2378_v36 = vld [vmem:[#allocation2 + $0x304] ss:$12 sps:$4 sm:$0xff]  }
  0x3f   : > { %1301 = vmatprep.subr.bf16.mxu1 %v2301_v37  ;;  %v2379_v37 = vld [vmem:[#allocation2 + $0xc8] ss:$12 sps:$4 sm:$0xff]  }
  0x41   : > { %1261 = vmatpush2.bf16.msra.mxu0 %v2303_v38  ;;  %v2376_v38 = vld [vmem:[#allocation2 + $0x300] ss:$12 sps:$4 sm:$0xff]  }
  0x42   : > { %1302 = vmatpush2.bf16.msra.mxu1 %v2304_v39  ;;  %1262 = vmatprep.subr.bf16.mxu0 %v2305_v40  ;;  %v2380_v39 = vld [vmem:[#allocation2 + $0x8] ss:$12 sps:$4 sm:$0xff]   ;;  %v2383_v40 = vld [vmem:[#allocation2 + $0x46c] ss:$12 sps:$4 sm:$0xff]  }
  0x43   : > { %1303 = vmatprep.subr.bf16.mxu1 %v2307_v41  ;;  %v2384_v41 = vld [vmem:[#allocation2 + $0x2f0] ss:$12 sps:$4 sm:$0xff]  }
  0x45   : > { %1263 = vmatpush2.bf16.msra.mxu0 %v2309_v42  ;;  %v2381_v42 = vld [vmem:[#allocation2 + $0x468] ss:$12 sps:$4 sm:$0xff]  }
  0x46   : > { %1304 = vmatpush2.bf16.msra.mxu1 %v2310_v43  ;;  %1264 = vmatprep.subr.bf16.mxu0 %v2311_v44  ;;  %v2385_v43 = vld [vmem:[#allocation2 + $0x230] ss:$12 sps:$4 sm:$0xff]   ;;  %v2388_v44 = vld [vmem:[#allocation2 + $0x454] ss:$12 sps:$4 sm:$0xff]  }
  0x47   : > { %1305 = vmatprep.subr.bf16.mxu1 %v2313_v45  ;;  %v2389_v45 = vld [vmem:[#allocation2 + $0x2d8] ss:$12 sps:$4 sm:$0xff]  }
  0x49   : > { %1265 = vmatpush2.bf16.msra.mxu0 %v2315_v47  ;;  %v2386_v47 = vld [vmem:[#allocation2 + $0x450] ss:$12 sps:$4 sm:$0xff]  }
  0x4a   : > { %1306 = vmatpush2.bf16.msra.mxu1 %v2316_v50  ;;  %1266 = vmatprep.subr.bf16.mxu0 %v2317_v51  ;;  %v2393_v50 = vld [vmem:[#allocation2 + $0x43c] ss:$12 sps:$4 sm:$0xff]   ;;  %v2394_v51 = vld [vmem:[#allocation2 + $0x2c0] ss:$12 sps:$4 sm:$0xff]  }
  0x4b   : > { %1307 = vmatprep.subr.bf16.mxu1 %v2319_v53  ;;  %v2391_v53 = vld [vmem:[#allocation2 + $0x438] ss:$12 sps:$4 sm:$0xff]  }
  0x4d   : > { %1267 = vmatpush2.bf16.msra.mxu0 %v2321_v54  ;;  %v2395_v54 = vld [vmem:[#allocation2 + $0x200] ss:$12 sps:$4 sm:$0xff]  }
  0x4e   : > { %1308 = vmatpush2.bf16.msra.mxu1 %v2322_v55  ;;  %1268 = vmatprep.subr.bf16.mxu0 %v2323_v56  ;;  %v2398_v55 = vld [vmem:[#allocation2 + $0x424] ss:$12 sps:$4 sm:$0xff]   ;;  %v2399_v56 = vld [vmem:[#allocation2 + $0x2a8] ss:$12 sps:$4 sm:$0xff]  }
  0x4f   : > { %1309 = vmatprep.subr.bf16.mxu1 %v2325_v57  ;;  %v2396_v57 = vld [vmem:[#allocation2 + $0x420] ss:$12 sps:$4 sm:$0xff]  }
  0x51   : > { %1269 = vmatpush2.bf16.msra.mxu0 %v2327_v58  ;;  %v2400_v58 = vld [vmem:[#allocation2 + $0x1e8] ss:$12 sps:$4 sm:$0xff]  }
  0x52   : > { %1310 = vmatpush2.bf16.msra.mxu1 %v2328_v59  ;;  %1270 = vmatprep.subr.bf16.mxu0 %v2329_v60  ;;  %v2403_v59 = vld [vmem:[#allocation2 + $0x40c] ss:$12 sps:$4 sm:$0xff]   ;;  %v2404_v60 = vld [vmem:[#allocation2 + $0x290] ss:$12 sps:$4 sm:$0xff]  }
  0x53   : > { %1311 = vmatprep.subr.bf16.mxu1 %v2331_v61  ;;  %v2401_v61 = vld [vmem:[#allocation2 + $0x408] ss:$12 sps:$4 sm:$0xff]  }
  0x55   : > { %1271 = vmatpush2.bf16.msra.mxu0 %v2333_v62  ;;  %v2405_v62 = vld [vmem:[#allocation2 + $0x1d0] ss:$12 sps:$4 sm:$0xff]  }
  0x56   : > { %1312 = vmatpush2.bf16.msra.mxu1 %v2334_v63  ;;  %1272 = vmatprep.subr.bf16.mxu0 %v2335_v0  ;;  %v2409_v63 = vld [vmem:[#allocation2 + $0x278] ss:$12 sps:$4 sm:$0xff]   ;;  %v2406_v0 = vld [vmem:[#allocation2 + $0x3f0] ss:$12 sps:$4 sm:$0xff]  }
  0x57   : > { %1313 = vmatprep.subr.bf16.mxu1 %v2337_v1  ;;  %v2410_v1 = vld [vmem:[#allocation2 + $0x1b8] ss:$12 sps:$4 sm:$0xff]  }
  0x59   : > { %1273 = vmatpush2.bf16.msra.mxu0 %v2339_v2  ;;  %v2413_v2 = vld [vmem:[#allocation2 + $0x3dc] ss:$12 sps:$4 sm:$0xff]  }
  0x5a   : > { %1314 = vmatpush2.bf16.msra.mxu1 %v2340_v3  ;;  %1324 = vmatprep.subr.bf16.mxu0 %v2343_v6  ;;  %v2414_v3 = vld [vmem:[#allocation2 + $0x260] ss:$12 sps:$4 sm:$0xff]   ;;  %v2418_v6 = vld [vmem:[#allocation2 + $0x3c4] ss:$12 sps:$4 sm:$0xff]  }
  0x5b   : > { %2104 = vmatprep.subr.bf16.mxu1 %v2344_v7  ;;  %v2419_v7 = vld [vmem:[#allocation2 + $0x248] ss:$12 sps:$4 sm:$0xff]  }
  0x5c   : > { %1275 = vmatmul.mubr.bf16.vlgmr.msra.gmra.mxu0 %v2586_v9 }
  0x5d   : > { %1316 = vmatmul.mubr.bf16.vlgmr.msra.gmra.mxu1 %v2588_v10  ;;  %1325 = vmatpush1.bf16.msra.mxu0 %v2341_v8  ;;  %v2416_v8 = vld [vmem:[#allocation2 + $0x3c0] ss:$12 sps:$4 sm:$0xff]  }
  0x5e   : > { %2105 = vmatpush3.bf16.msra.mxu1 %v2345_v11  ;;  %1326 = vmatprep.subr.bf16.mxu0 %v2348_v12  ;;  %v243_v11 = vld [vmem:[%s2574_s6 + $0x20] sm:$0xff]  ;;  %v2421_v12 = vld [vmem:[#allocation2 + $0x470] ss:$12 sps:$4 sm:$0xff]  }
  0x5f   : > { %2106 = vmatprep.subr.bf16.mxu1 %v2349_v13  ;;  %1397 = vmatprep.mubr.bf16.mxu1 %v2577_v48  ;;  %v2594_v48 = vpack.c.bf16 %v244_v46, %v244_v46  ;;  %v2422_v13 = vld [vmem:[#allocation2 + $0x3b0] ss:$12 sps:$4 sm:$0xff]  }
  0x61   : > { %1327 = vmatpush1.bf16.msra.mxu0 %v2346_v14  ;;  %1356 = vmatprep.mubr.bf16.mxu0 %v2594_v48  ;;  %v249_v14 = vpack.c.bf16 %v243_v11, %v243_v11 }
  0x62   : > { %2107 = vmatpush3.bf16.msra.mxu1 %v2350_v15  ;;  %1328 = vmatprep.subr.bf16.mxu0 %v2353_v16  ;;  %v2423_v15 = vld [vmem:[#allocation2 + $0x458] ss:$12 sps:$4 sm:$0xff]  }
  0x63   : > { %2108 = vmatprep.subr.bf16.mxu1 %v2354_v17  ;;  %v2424_v16 = vld [vmem:[#allocation2 + $0x398] ss:$12 sps:$4 sm:$0xff]   ;;  %v2425_v17 = vld [vmem:[#allocation2 + $0x440] ss:$12 sps:$4 sm:$0xff]  }
  0x65   : > { %1329 = vmatpush1.bf16.msra.mxu0 %v2351_v18  ;;  %v2426_v18 = vld [vmem:[#allocation2 + $0x380] ss:$12 sps:$4 sm:$0xff]  }
  0x66   : > { %2109 = vmatpush3.bf16.msra.mxu1 %v2355_v19  ;;  %1330 = vmatprep.subr.bf16.mxu0 %v2358_v20  ;;  %v2427_v19 = vld [vmem:[#allocation2 + $0x428] ss:$12 sps:$4 sm:$0xff]  }
  0x67   : > { %2110 = vmatprep.subr.bf16.mxu1 %v2359_v21  ;;  %v2428_v20 = vld [vmem:[#allocation2 + $0x368] ss:$12 sps:$4 sm:$0xff]   ;;  %v2429_v21 = vld [vmem:[#allocation2 + $0x410] ss:$12 sps:$4 sm:$0xff]  }
  0x69   : > { %1331 = vmatpush1.bf16.msra.mxu0 %v2356_v22  ;;  %v2430_v22 = vld [vmem:[#allocation2 + $0x350] ss:$12 sps:$4 sm:$0xff]  }
  0x6a   : > { %2111 = vmatpush3.bf16.msra.mxu1 %v2360_v23  ;;  %1332 = vmatprep.subr.bf16.mxu0 %v2363_v24  ;;  %v2431_v23 = vld [vmem:[#allocation2 + $0x3f8] ss:$12 sps:$4 sm:$0xff]   ;;  %v2433_v24 = vld [vmem:[#allocation2 + $0x3e0] ss:$12 sps:$4 sm:$0xff]  }
  0x6b   : > { %2112 = vmatprep.subr.bf16.mxu1 %v2364_v25  ;;  %v2434_v25 = vld [vmem:[#allocation2 + $0x320] ss:$12 sps:$4 sm:$0xff]  }
  0x6d   : > { %1333 = vmatpush1.bf16.msra.mxu0 %v2361_v26  ;;  %v2435_v26 = vld [vmem:[#allocation2 + $0x3c8] ss:$12 sps:$4 sm:$0xff]  }
  0x6e   : > { %2113 = vmatpush3.bf16.msra.mxu1 %v2365_v27  ;;  %1334 = vmatprep.subr.bf16.mxu0 %v2368_v28  ;;  %v2436_v27 = vld [vmem:[#allocation2 + $0x308] ss:$12 sps:$4 sm:$0xff]   ;;  %v447_v28 = vlaneseq }
  0x6f   : > { %2114 = vmatprep.subr.bf16.mxu1 %v2369_v29 }
  0x70   : > { %v2603_v29 = vshrl.u32 %v447_v28, 7 }
  0x71   : > { %1335 = vmatpush1.bf16.msra.mxu0 %v2366_v30 }
  0x72   : > { %2115 = vmatpush3.bf16.msra.mxu1 %v2370_v31  ;;  %1336 = vmatprep.subr.bf16.mxu0 %v2373_v32  ;;  %v449_v30 = vsub.s32 0, %v2603_v29  ;;  %v2609_v31 = vld [vmem:[%s2730_s2] sm:$0x77]  ;;  %v453_v32 = vsub.s32 4, %v2603_v29 }
  0x73   : > { %2116 = vmatprep.subr.bf16.mxu1 %v2374_v33 }
  0x74   : > { %v450_v33 = vrot.slane %v2609_v31, %v449_v30 }
  0x75   : > { %1337 = vmatpush1.bf16.msra.mxu0 %v2371_v34  ;;  %v454_v34 = vrot.slane %v2609_v31, %v453_v32 }
  0x76   : > { %2117 = vmatpush3.bf16.msra.mxu1 %v2375_v35  ;;  %1338 = vmatprep.subr.bf16.mxu0 %v2378_v36  ;;  %v465_v35 = vrot.slane %v450_v33, %v449_v30 }
  0x77   : > { %2118 = vmatprep.subr.bf16.mxu1 %v2379_v37  ;;  %v469_v36 = vrot.slane %v454_v34, %v449_v30 }
  0x79   : > { %1339 = vmatpush1.bf16.msra.mxu0 %v2376_v38 }
  0x7a   : > { %2119 = vmatpush3.bf16.msra.mxu1 %v2380_v39  ;;  %1340 = vmatprep.subr.bf16.mxu0 %v2383_v40 }
  0x7b   : > { %2126 = vmatprep.subr.bf16.mxu1 %v2384_v41 }
  0x7d   : > { %1398 = vmatmul.mubr.bf16.vlgmr.msra.gmra.mxu1 %v2586_v9  ;;  %1341 = vmatpush2.bf16.msra.mxu0 %v2381_v42  ;;  %v2420_v9 = vld [vmem:[#allocation2 + $0x188] ss:$12 sps:$4 sm:$0xff]  }
  0x7e   : > { %2127 = vmatpush3.bf16.msra.mxu1 %v2385_v43  ;;  %1342 = vmatprep.subr.bf16.mxu0 %v2388_v44 }
  0x7f   : > { %2128 = vmatprep.subr.bf16.mxu1 %v2389_v45  ;;  %1437 = vmatprep.mubr.bf16.mxu1 %v2580_v52  ;;  %v2408_v52 = vld [vmem:[#allocation2 + $0x3f4] ss:$12 sps:$4 sm:$0xff]  }
  0x81   : > { %1343 = vmatpush2.bf16.msra.mxu0 %v2386_v47 }
  0x82   : > { %2129 = vmatpush3.bf16.msra.mxu1 %v2390_v49  ;;  %1344 = vmatprep.subr.bf16.mxu0 %v2393_v50 }
  0x83   : > { %2130 = vmatprep.subr.bf16.mxu1 %v2394_v51 }
  0x85   : > { %1345 = vmatpush2.bf16.msra.mxu0 %v2391_v53 }
  0x86   : > { %2131 = vmatpush3.bf16.msra.mxu1 %v2395_v54  ;;  %1346 = vmatprep.subr.bf16.mxu0 %v2398_v55 }
  0x87   : > { %2132 = vmatprep.subr.bf16.mxu1 %v2399_v56 }
  0x89   : > { %1347 = vmatpush2.bf16.msra.mxu0 %v2396_v57 }
  0x8a   : > { %2133 = vmatpush3.bf16.msra.mxu1 %v2400_v58  ;;  %1348 = vmatprep.subr.bf16.mxu0 %v2403_v59 }
  0x8b   : > { %2134 = vmatprep.subr.bf16.mxu1 %v2404_v60 }
  0x8d   : > { %1349 = vmatpush2.bf16.msra.mxu0 %v2401_v61 }
  0x8e   : > { %2135 = vmatpush3.bf16.msra.mxu1 %v2405_v62  ;;  %1350 = vmatprep.subr.bf16.mxu0 %v2408_v52  ;;  %v2617_v62 = vld [vmem:[%s2730_s2 + $0x8] sm:$0x7] }
  0x8f   : > { %2136 = vmatprep.subr.bf16.mxu1 %v2409_v63  ;;  %v458_v52 = vrot.slane %v2617_v62, %v449_v30 }
  0x91   : > { %1351 = vmatpush2.bf16.msra.mxu0 %v2406_v0  ;;  %v473_v63 = vrot.slane %v458_v52, %v449_v30  ;;  %v1545_v52 = vsub.s32 6, %v2603_v29 }
  0x92   : > { %2137 = vmatpush3.bf16.msra.mxu1 %v2410_v1  ;;  %1352 = vmatprep.subr.bf16.mxu0 %v2413_v2 }
  0x93   : > { %2138 = vmatprep.subr.bf16.mxu1 %v2414_v3 }
  0x95   : > { %1353 = vmatpush2.bf16.msra.mxu0 %v2411_v4 }
  0x96   : > { %2139 = vmatpush3.bf16.msra.mxu1 %v2415_v5  ;;  %1354 = vmatprep.subr.bf16.mxu0 %v2418_v6 }
  0x97   : > { %2140 = vmatprep.subr.bf16.mxu1 %v2419_v7 }
  0x99   : > { %1355 = vmatpush2.bf16.msra.mxu0 %v2416_v8 }
  0x9a   : > { %2141 = vmatpush3.bf16.msra.mxu1 %v2420_v9  ;;  %2148 = vmatprep.subr.bf16.mxu0 %v2421_v12 }
  0x9c   : > { %1357 = vmatmul.mubr.bf16.vlgmr.msra.gmra.mxu0 %v249_v14 }
  0x9d   : > { %1438 = vmatmul.mubr.bf16.vlgmr.msra.gmra.mxu1 %v2588_v10  ;;  %2149 = vmatpush3.bf16.msra.mxu0 %v2422_v13  ;;  %v2432_v10 = vld [vmem:[#allocation2 + $0x338] ss:$12 sps:$4 sm:$0xff]  }
  0x9e   : > { %1477 = vmatprep.mubr.bf16.mxu0 %v2594_v48  ;;  %2150 = vmatprep.subr.bf16.mxu0 %v2423_v15 }
  0xa1   : > { %2151 = vmatpush3.bf16.msra.mxu0 %v2424_v16 }
  0xa2   : > { %2152 = vmatprep.subr.bf16.mxu0 %v2425_v17 }
  0xa5   : > { %2153 = vmatpush3.bf16.msra.mxu0 %v2426_v18  ;;  %v2437_v18 = vld [vmem:[%s2731_s3 + $0x78] sm:$0xff]  }
  0xa6   : > { %2154 = vmatprep.subr.bf16.mxu0 %v2427_v19  ;;  %v2438_v19 = vld [vmem:[%s2731_s3 + $0xb8] sm:$0xff]   ;;  %2170 = vmatprep.subr.bf16.mxu1 %v2437_v18 }
  0xa9   : > { %2155 = vmatpush3.bf16.msra.mxu0 %v2428_v20  ;;  %v2439_v20 = vld [vmem:[%s2731_s3 + $0x38] sm:$0xff]  }
  0xaa   : > { %2156 = vmatprep.subr.bf16.mxu0 %v2429_v21  ;;  %v2506_v21 = vmov 0.0   ;;  %2171 = vmatpush3.bf16.msra.mxu1 %v2439_v20 }
  0xad   : > { %2157 = vmatpush3.bf16.msra.mxu0 %v2430_v22  ;;  %v2440_v22 = vld [vmem:[%s2731_s3 + $0x70] sm:$0xff]  }
  0xae   : > { %2158 = vmatprep.subr.bf16.mxu0 %v2431_v23  ;;  %v2441_v23 = vld [vmem:[%s2731_s3 + $0xb0] sm:$0xff]   ;;  %2172 = vmatprep.subr.bf16.mxu1 %v2440_v22 }
  0xb1   : > { %2159 = vmatpush3.bf16.msra.mxu0 %v2432_v10 }
  0xb2   : > { %2160 = vmatprep.subr.bf16.mxu0 %v2433_v24 }
  0xb5   : > { %2161 = vmatpush3.bf16.msra.mxu0 %v2434_v25 }
  0xb6   : > { %2162 = vmatprep.subr.bf16.mxu0 %v2435_v26 }
  0xb9   : > { %2163 = vmatpush3.bf16.msra.mxu0 %v2436_v27 }
  0xba   : > { %2201 = vmatprep.subr.bf16.mxu0 %v2506_v21 }
  0xbc   : > { %1478 = vmatmul.mubr.bf16.vlgmr.msra.gmra.mxu0 %v249_v14 }
  0xbd   : > { %2202 = vmatpush3.bf16.msra.mxu0 %v2438_v19  ;;  %2217 = vmatprep.mubr.msk.bf16.mxu0 %vm2507_vm0, %v2506_v21 }
  0xbe   : > { %2203 = vmatprep.subr.bf16.mxu0 %v2506_v21 }
  0xc1   : > { %2204 = vmatpush3.bf16.msra.mxu0 %v2441_v23 }
  0xc2   : > { %2205 = vmatprep.subr.bf16.mxu0 %v2506_v21 }
 0x11c   : > { %v1276_v37 = vpop.f32.mrf.mxu0 }
 0x11d   : > { %v1317_v38 = vpop.f32.mrf.mxu1  ;;  %v1277_v39 = vadd.f32 %v1276_v37, %v465_v35  ;;  %v2443_v37 = vld [vmem:[%s2731_s3 + $0x68] sm:$0xff]  }
 0x11e   : > { %v1278_v40 = vpop.f32.mrf.mxu0 }
 0x11f   : > { %v1319_v41 = vpop.f32.mrf.mxu1  ;;  %v1279_v42 = vadd.f32 %v1278_v40, %v469_v36  ;;  %v1318_v43 = vadd.f32 %v1317_v38, %v1277_v39  ;;  %v2442_v36 = vld [vmem:[%s2731_s3 + $0x30] sm:$0xff]   ;;  %v2444_v38 = vld [vmem:[%s2731_s3 + $0xa8] sm:$0xff]   ;;  %v2446_v40 = vld [vmem:[%s2731_s3 + $0x60] sm:$0xff]  }
 0x120   : > { %v1280_v44 = vpop.f32.mrf.mxu0  ;;  %2173 = vmatpush3.bf16.msra.mxu1 %v2442_v36  ;;  %v2445_v39 = vld [vmem:[%s2731_s3 + $0x28] sm:$0xff]   ;;  %2206 = vmatpush3.bf16.msra.mxu0 %v2444_v38 }
 0x121   : > { %v1321_v45 = vpop.f32.mrf.mxu1  ;;  %v1320_v46 = vadd.f32 %v1319_v41, %v1279_v42  ;;  %2174 = vmatprep.subr.bf16.mxu1 %v2443_v37  ;;  %2207 = vmatprep.subr.bf16.mxu0 %v2506_v21  ;;  %v2447_v41 = vld [vmem:[%s2731_s3 + $0xa0] sm:$0xff]   ;;  %v2450_v44 = vld [vmem:[%s2731_s3 + $0x98] sm:$0xff]   ;;  %v1852_v37 = vand.u32 127, %v447_v28 }
 0x122   : > { %v1281_v47 = vpop.f32.mrf.mxu0  ;;  %v2448_v42 = vld [vmem:[%s2731_s3 + $0x20] sm:$0xff]   ;;  %v2451_v45 = vld [vmem:[%s2731_s3 + $0x18] sm:$0xff]  }
 0x123   : > { %v1322_v48 = vpop.f32.mrf.mxu1  ;;  %v2453_v47 = vld [vmem:[%s2731_s3 + $0x90] sm:$0xff]   ;;  %vm1853_vm1 = vcmp.ge.s32.totalorder %v1852_v37, 3 }
 0x124   : > { %2175 = vmatpush3.bf16.msra.mxu1 %v2445_v39  ;;  %2208 = vmatpush3.bf16.msra.mxu0 %v2447_v41  ;;  %v2454_v48 = vld [vmem:[%s2731_s3 + $0x10] sm:$0xff]  }
 0x125   : > { %2176 = vmatprep.subr.bf16.mxu1 %v2446_v40  ;;  %2209 = vmatprep.subr.bf16.mxu0 %v2506_v21 }
 0x128   : > { %2177 = vmatpush3.bf16.msra.mxu1 %v2448_v42  ;;  %2210 = vmatpush3.bf16.msra.mxu0 %v2450_v44 }
 0x129   : > { %2211 = vmatprep.subr.bf16.mxu0 %v2506_v21 }
 0x12c   : > { %2212 = vmatpush3.bf16.msra.mxu0 %v2453_v47 }
 0x12d   : > { %2213 = vmatprep.subr.bf16.mxu0 %v2506_v21 }
 0x13d   : > { %v2120_v49 = vpop.f32.mrf.mxu1 }
 0x13f   : > { %v2121_v50 = vpop.f32.mrf.mxu1 }
 0x140   : > { %v2122_v0 = vadd.f32 %v2121_v50, %v2120_v49  ;;  %v2455_v49 = vld [vmem:[%s2731_s3 + $0x48] sm:$0xff]  }
 0x141   : > { %v2123_v51 = vpop.f32.mrf.mxu1  ;;  %v2456_v50 = vld [vmem:[%s2731_s3 + $0x88] sm:$0xff]  }
 0x142   : > { %v1400_v1 = vadd.f32 %v2122_v0, %v473_v63  ;;  %v2457_v51 = vld [vmem:[%s2731_s3 + $0x8] sm:$0xff]   ;;  %2214 = vmatpush3.bf16.msra.mxu0 %v2456_v50 }
 0x143   : > { %v2124_v53 = vpop.f32.mrf.mxu1  ;;  %2215 = vmatprep.subr.bf16.mxu0 %v2506_v21 }
 0x144   : > { %v2458_v53 = vld [vmem:[%s2731_s3 + $0x40] sm:$0xff]  }
 0x15c   : > { %v1358_v54 = vpop.f32.mrf.mxu0 }
 0x15d   : > { %v2142_v55 = vpop.f32.mrf.mxu1  ;;  %v1359_v5 = vadd.f32 %v1358_v54, %v1318_v43  ;;  %v2449_v43 = vld [vmem:[%s2731_s3 + $0x58] sm:$0xff]   ;;  %v2459_v54 = vld [vmem:[%s2731_s3 + $0x80] sm:$0xff]  }
 0x15e   : > { %v1360_v56 = vpop.f32.mrf.mxu0  ;;  %2178 = vmatprep.subr.bf16.mxu1 %v2449_v43  ;;  %2216 = vmatpush3.bf16.msra.mxu0 %v2459_v54 }
 0x15f   : > { %v2143_v57 = vpop.f32.mrf.mxu1  ;;  %v1361_v2 = vadd.f32 %v1360_v56, %v1320_v46  ;;  %v1485_v12 = vmax.f32 %v1359_v5, 0.0  ;;  %v2452_v46 = vld [vmem:[%s2731_s3 + $0x50] sm:$0xff]   ;;  %2179 = vmatpush3.bf16.msra.mxu1 %v2451_v45 }
 0x160   : > { %v1362_v58 = vpop.f32.mrf.mxu0  ;;  %v2144_v3 = vadd.f32 %v2143_v57, %v2142_v55  ;;  %2180 = vmatprep.subr.bf16.mxu1 %v2452_v46  ;;  %v2460_v55 = vld [vmem:[%s2731_s3] sm:$0xff]  }
 0x161   : > { %v2145_v59 = vpop.f32.mrf.mxu1  ;;  %v1486_v7 = vmax.f32 %v1361_v2, 0.0 }
 0x162   : > { %v1363_v60 = vpop.f32.mrf.mxu0  ;;  %v1440_v8 = vadd.f32 %v2144_v3, %v1400_v1  ;;  %v1511_v59 = vsub.s32 1, %v2603_v29  ;;  %v1546_v3 = vrot.slane %v2609_v31, %v1545_v52 }
 0x163   : > { %v2146_v61 = vpop.f32.mrf.mxu1  ;;  %v1488_v16 = vadd.f32 %v1486_v7, %v1485_v12  ;;  %2181 = vmatpush3.bf16.msra.mxu1 %v2454_v48  ;;  %v1515_v60 = vsub.s32 5, %v2603_v29 }
 0x164   : > { %2182 = vmatprep.subr.bf16.mxu1 %v2455_v49  ;;  %v1541_v61 = vsub.s32 2, %v2603_v29  ;;  %v1520_v63 = vrot.slane %v2617_v62, %v1511_v59  ;;  %v1512_v1 = vrot.slane %v2609_v31, %v1511_v59 }
 0x165   : > { %v1516_v0 = vrot.slane %v2609_v31, %v1515_v60 }
 0x166   : > { %v1550_v2 = vrot.slane %v2617_v62, %v1541_v61 }
 0x167   : > { %2183 = vmatpush3.bf16.msra.mxu1 %v2457_v51  ;;  %v1531_v5 = vrot.slane %v1516_v0, %v1511_v59 }
 0x168   : > { %2184 = vmatprep.subr.bf16.mxu1 %v2458_v53 }
 0x16b   : > { %2185 = vmatpush3.bf16.msra.mxu1 %v2460_v55 }
 0x17c   : > { %v2164_v4 = vpop.f32.mrf.mxu0 }
 0x17e   : > { %v2165_v6 = vpop.f32.mrf.mxu0 }
 0x17f   : > { %v2166_v9 = vadd.f32 %v2165_v6, %v2164_v4  ;;  %v1542_v4 = vrot.slane %v2609_v31, %v1541_v61  ;;  %v1535_v6 = vrot.slane %v1520_v63, %v1511_v59 }
 0x180   : > { %v2167_v11 = vpop.f32.mrf.mxu0 }
 0x181   : > { %v1480_v13 = vadd.f32 %v2166_v9, %v1440_v8  ;;  %v1561_v9 = vrot.slane %v1546_v3, %v1541_v61  ;;  %v1565_v11 = vrot.slane %v1550_v2, %v1541_v61 }
 0x182   : > { %v2168_v14 = vpop.f32.mrf.mxu0 }
 0x183   : > { %v1487_v15 = vmax.f32 %v1480_v13, 0.0  ;;  %v1557_v14 = vrot.slane %v1542_v4, %v1541_v61 }
 0x185   : > { %v1489_v17 = vadd.f32 %v1488_v16, %v1487_v15 }
 0x187   : > { %1490 = vadd.xlane.f32.xlu0 %v1489_v17 }
 0x210   : > { %v1491_v10 = vpop.xlane.xlu0 %1490 }
 0x211   : > { %v1492_v24 = vmul.f32 0.0026041667, %v1491_v10 }
 0x213   : > { %v2635_v25 = vsub.f32 %v1485_v12, %v1492_v24  ;;  %v2637_v26 = vsub.f32 %v1486_v7, %v1492_v24  ;;  %v2639_v27 = vsub.f32 %v1487_v15, %v1492_v24  ;;  %v1527_v7 = vrot.slane %v1512_v1, %v1511_v59  ;;  %v2077_v24 = vld [vmem:[%s2732_s4] ss:$0 sm:$0xff] }
 0x215   : > { %v1496_v30 = vmul.f32 %v2635_v25, %v2635_v25  ;;  %v1497_v32 = vmul.f32 %v2637_v26, %v2637_v26  ;;  %v1498_v33 = vmul.f32 %v2639_v27, %v2639_v27 }
 0x217   : > { %v1499_v34 = vadd.f32 %v1497_v32, %v1496_v30 }
 0x219   : > { %v1500_v35 = vadd.f32 %v1499_v34, %v1498_v33 }
 0x21b   : > { %1501 = vadd.xlane.f32.xlu0 %v1500_v35 }
 0x2a4   : > { %v1502_v56 = vpop.xlane.xlu0 %1501 }
 0x2a5   : > { %v1503_v57 = vmul.f32 0.0026041667, %v1502_v56 }
 0x2a7   : > { %v1504_v58 = vadd.f32 1e-12, %v1503_v57 }
 0x2a9   : > { %2461 = vrsqrt.f32 %v1504_v58 }
 0x2b6   : > { %v2462_v8 = vpop.eup %2461 }
 0x2b7   : > { %v1507_v29 = vmul.f32 %v2462_v8, %v2637_v26  ;;  %v1508_v12 = vmul.f32 %v2462_v8, %v2639_v27  ;;  %v1506_v13 = vmul.f32 %v2462_v8, %v2635_v25 }
 0x2b9   : > { %v1537_v15 = vmul.f32 %v1531_v5, %v1507_v29  ;;  %v1538_v16 = vmul.f32 %v1535_v6, %v1508_v12  ;;  %v1536_v62 = vmul.f32 %v1527_v7, %v1506_v13 }
 0x2bb   : > { %v1567_v17 = vadd.f32 %v1561_v9, %v1537_v15  ;;  %v1568_v18 = vadd.f32 %v1565_v11, %v1538_v16  ;;  %v1566_v19 = vadd.f32 %v1557_v14, %v1536_v62 }
 0x2bd   : > { %v1570_v31 = vpack.c.bf16 %v1567_v17, %v1567_v17  ;;  %v1571_v20 = vpack.c.bf16 %v1568_v18, %v1568_v18  ;;  %v1569_v21 = vpack.c.bf16 %v1566_v19, %v1566_v19 }
 0x2bf   : > { %1803 = vmatprep.mubr.bf16.mxu1 %v1570_v31  ;;  %2218 = vmatmul.mubr.bf16.vlgmr.msra.gmra.mxu0 %v1571_v20 }
 0x2c0   : > { %1804 = vmatmul.mubr.bf16.vlgmr.msra.gmra.mxu1 %v1569_v21 }
 0x37f   : > { %v1845_v22 = vpop.f32.mrf.mxu0 }
 0x380   : > { %v2186_v23 = vpop.f32.mrf.mxu1 }
 0x381   : > { %v2219_v10 = vpop.f32.mrf.mxu0 }
 0x382   : > { %v2187_v25 = vpop.f32.mrf.mxu1 }
 0x383   : > { %v2188_v26 = vadd.f32 %v2187_v25, %v2186_v23  ;;  %v1848_v27 = vpop.f32.mrf.mxu0 }
 0x384   : > { %v2189_v30 = vpop.f32.mrf.mxu1 }
 0x385   : > { %v1806_v32 = vadd.f32 %v2188_v26, %v2077_v24  ;;  %v2220_v33 = vpop.f32.mrf.mxu0 }
 0x386   : > { %v2190_v34 = vpop.f32.mrf.mxu1 }
 0x387   : > { %v1846_v35 = vadd.f32 %v1845_v22, %v1806_v32 }
 0x389   : > { %v1854_v36 = vmul.f32 1.442695, %v1846_v35 }
 0x38b   : > { %2463 = vpow2.f32 %v1854_v36 }
 0x398   : > { %v2464_v38 = vpop.eup %2463 }
 0x399   : > { %v1856_v39 = vsel %vm1853_vm1, %v2464_v38, %v1846_v35 }
 0x39a   : > { %1858 = vst.msk [vmem:[%s237_s20] sm:$0xff] %vm1857_vm2, %v1856_v39 }
 0x39b PF: > { %s16_s18 = sadd.s32 1, %s2501_s18  }
 0x39c   : > { %p13_p1 = scmp.ge.s32.totalorder %s16_s18, 5  }
 0x39e   :  { %15 = sbr.rel (!%p13_p1) target bundleno = 1 (0x1), region = 75 }
 0x3a3   :  { %1878 = vsyncpa [#allocation3], 1 }
 0x3a4   :  { %1880 = vsyncpa [#allocation3 + $0x1], 1 }

</bundles_post_ra>
